<compile_context>
chip_gen: v7x
topology: tpu7x:2x2x1
jax: 0.10.0
libtpu: 0.0.40
codegen_flags: <defaults>
</compile_context>

<pallas_src>
import numpy as np
import jax
import jax.numpy as jnp
from jax import lax
from jax.experimental import pallas as pl
from jax.experimental.pallas import tpu as pltpu


def _fused_kernel(x_ref, a_ref, b_ref, o_ref):
    # x_ref : (TC, TM)  input block, rows = flattened (channel, time), lanes = h*w pixels
    # a_ref : (TC, TC)  banded effective operator (taps + residual + fuse folded), x.dtype
    # b_ref : (TC, 128) lane-dense effective bias (f32), identical across lanes
    # o_ref : (TC, TM)  output block, x.dtype
    acc = jnp.dot(a_ref[...], x_ref[...], preferred_element_type=jnp.float32)
    bias = b_ref[...][:, :1]                      # full-width load, lane-0 slice, bcast in add
    o_ref[...] = (acc + bias).astype(o_ref.dtype)


def _choose_tm(mp, batch, row_bytes, data_budget, *, min_steps=8, min_tm=512):
    """Largest 128-multiple lane tile dividing mp whose 4 double-buffered data blocks fit
    `data_budget`; split further (never below min_tm lanes) only if that reaches
    min_steps total grid steps (keeps both v7x TensorCores pipelined)."""
    cands = [tm for tm in range(128, mp + 1, 128)
             if mp % tm == 0 and 4 * tm * row_bytes <= data_budget]
    if not cands:
        return 128
    tm = max(cands)
    while batch * (mp // tm) < min_steps:
        smaller = [c for c in cands if c < tm and c >= min_tm]
        if not smaller:
            break
        tm = max(smaller)
    return tm


def real_multiscale_causal_conv(x, w_up, b_up, w_dn, b_dn, w_fuse):
    """x: (b, c, t, h, w). w_up/w_dn: (c//2, c//2, 3) PyTorch Conv1d weights.
    b_up/b_dn: (c//2,). w_fuse: (c, c) squeezed 1x1x1 Conv3d weight.
    Returns (b, c, t, h, w) in x.dtype (pass bf16 x for bf16 I/O)."""
    b, c, t, h, w = x.shape
    assert c % 2 == 0, "channel count must be even (module splits channels in half)"
    c2 = c // 2
    hw = h * w
    TC = c * t
    cdtype = x.dtype
    item = jnp.dtype(cdtype).itemsize
    hi = lax.Precision.HIGHEST

    # ---- fold taps + residual + bias + 1x1x1 fuse into one banded operator (tiny, f32) ----
    # out[o, tt] = b_eff[o] + sum_k sum_i M_k[o, i] * x[i, tt - 2 + k]
    # with M_k = w_fuse @ (blockdiag(w_up[..,k], w_dn[..,k]) + [k==2] * I)  (residual folded).
    wf = w_fuse.astype(jnp.float32)
    eye_c = jnp.eye(c, dtype=jnp.float32)
    A32 = jnp.zeros((TC, TC), jnp.float32)
    for k in range(3):
        blk = jnp.zeros((c, c), jnp.float32)
        blk = blk.at[:c2, :c2].set(w_up[:, :, k].astype(jnp.float32))
        blk = blk.at[c2:, c2:].set(w_dn[:, :, k].astype(jnp.float32))
        if k == 2:
            blk = blk + eye_c
        m_k = jnp.dot(wf, blk, precision=hi)                               # (out, in)
        # channel-major / time-minor rows: A[o*t+tt, i*t+tp], tap k hits subdiagonal (2-k)
        A32 = A32 + jnp.kron(m_k, jnp.eye(t, k=k - 2, dtype=jnp.float32))
    b_eff = jnp.dot(wf, jnp.concatenate([b_up, b_dn]).astype(jnp.float32), precision=hi)
    b_rows = jnp.repeat(b_eff, t)                                          # row = o*t + tt
    b_mat = jnp.broadcast_to(b_rows[:, None], (TC, 128)).astype(jnp.float32)
    A = A32.astype(cdtype)

    # ---- free relayout: (b, c, t, h, w) -> (b, c*t, h*w); pad lanes only if needed --------
    x3 = x.reshape(b, TC, hw)
    Mp = ((hw + 127) // 128) * 128
    if Mp != hw:
        x3 = jnp.pad(x3, ((0, 0), (0, 0), (0, Mp - hw)))   # only non-free path (rare shapes)

    # ---- generation-aware VMEM budget -------------------------------------------------------
    try:
        phys = int(getattr(pltpu.get_tpu_info(), "vmem_capacity_bytes", 64 << 20))
    except Exception:
        phys = 64 << 20                                    # v7x per-core lower bound
    phys = max(phys, 64 << 20)
    budget = min(int(phys * 0.75), phys - (16 << 20))      # ~48 MiB v7x, ~96 MiB v5e/v6e
    # A and bias are double-buffered by BlockSpec even with a constant index_map.
    weight_bytes = 2 * TC * TC * item + 2 * TC * 128 * 4
    fixed = weight_bytes + (2 << 20)                       # + Mosaic internal scratch margin
    if fixed >= budget:
        # TODO(synk): 3-tap stacked-weight path for very large t*c (dense operator too big).
        raise ValueError(f"t*c={TC} too large for the dense banded-operator path "
                         f"({weight_bytes >> 20} MiB of resident weights)")
    row_bytes = TC * item
    tm = _choose_tm(Mp, b, row_bytes, budget - fixed)
    est_vmem = fixed + 4 * tm * row_bytes                  # in + out, double-buffered
    grid = (b, Mp // tm)

    out = pl.pallas_call(
        _fused_kernel,
        out_shape=jax.ShapeDtypeStruct((b, TC, Mp), cdtype),
        grid_spec=pltpu.PrefetchScalarGridSpec(
            num_scalar_prefetch=0,
            grid=grid,
            in_specs=[
                pl.BlockSpec((None, TC, tm), lambda bi, mi: (bi, 0, mi)),
                pl.BlockSpec((TC, TC), lambda bi, mi: (0, 0)),
                pl.BlockSpec((TC, 128), lambda bi, mi: (0, 0)),
            ],
            out_specs=pl.BlockSpec((None, TC, tm), lambda bi, mi: (bi, 0, mi)),
        ),
        compiler_params=pltpu.CompilerParams(
            dimension_semantics=("parallel", "parallel"),
            vmem_limit_bytes=int(max(est_vmem, 32 << 20)),  # never below the estimate
        ),
    )(x3, A, b_mat)

    if Mp != hw:
        out = out[:, :, :hw]
    return out.reshape(b, c, t, h, w)                      # free reshape back


def _reference_np(x, w_up, b_up, w_dn, b_dn, w_fuse):
    """Pure numpy float64 reference matching the PyTorch forward."""
    x = np.asarray(x, np.float64)
    w_up = np.asarray(w_up, np.float64)
    b_up = np.asarray(b_up, np.float64)
    w_dn = np.asarray(w_dn, np.float64)
    b_dn = np.asarray(b_dn, np.float64)
    w_fuse = np.asarray(w_fuse, np.float64)

    b, c, t, h, w = x.shape
    c2 = c // 2
    xu, xd = x[:, :c2], x[:, c2:]

    def causal(xh, W, bias):
        y = np.zeros_like(xh)
        for k in range(3):
            shift = 2 - k
            xs = np.pad(xh, ((0, 0), (0, 0), (shift, 0), (0, 0), (0, 0)))[:, :, :t]
            y = y + np.einsum('oi,bithw->bothw', W[:, :, k], xs)
        return y + bias[None, :, None, None, None]

    yu = causal(xu, w_up, b_up) + xu
    yd = causal(xd, w_dn, b_dn) + xd
    y = np.concatenate([yu, yd], axis=1)
    return np.einsum('oi,bithw->bothw', w_fuse, y)


if __name__ == "__main__":
    # small shapes: b=2, c_in=c_out=8 (halves of 4), t=8, h=w=16  ->  hw=256, t*c=64
    b, c_in, t, h, w = 2, 8, 8, 16, 16
    c2 = c_in // 2

    key = jax.random.PRNGKey(0)
    k_x, k_wu, k_bu, k_wd, k_bd, k_wf = jax.random.split(key, 6)

    x = jax.random.normal(k_x, (b, c_in, t, h, w), dtype=jnp.float32)
    # Conv1d weights: (out, in, k); fuse Conv3d 1x1x1 weight squeezed to (out, in)
    w_up = jax.random.normal(k_wu, (c2, c2, 3), dtype=jnp.float32) * 0.1
    b_up = jax.random.normal(k_bu, (c2,), dtype=jnp.float32) * 0.1
    w_dn = jax.random.normal(k_wd, (c2, c2, 3), dtype=jnp.float32) * 0.1
    b_dn = jax.random.normal(k_bd, (c2,), dtype=jnp.float32) * 0.1
    w_fuse = jax.random.normal(k_wf, (c_in, c_in), dtype=jnp.float32) * 0.1

    ref = _reference_np(x, w_up, b_up, w_dn, b_dn, w_fuse)

    # f32 path (strict tolerance vs f64 reference)
    out = jax.block_until_ready(real_multiscale_causal_conv(x, w_up, b_up, w_dn, b_dn, w_fuse))
    assert out.shape == (b, c_in, t, h, w)
    assert out.dtype == x.dtype
    assert np.allclose(np.asarray(out, np.float64), ref, rtol=1e-4, atol=1e-4), "f32 mismatch"

    # bf16 I/O path (halves HBM traffic, native-rate MXU on v6e/v7x) -- loose tolerance
    out_bf = jax.block_until_ready(
        real_multiscale_causal_conv(x.astype(jnp.bfloat16), w_up, b_up, w_dn, b_dn, w_fuse))
    assert out_bf.shape == (b, c_in, t, h, w)
    assert out_bf.dtype == jnp.bfloat16
    assert np.allclose(np.asarray(out_bf, np.float64), ref, rtol=1e-1, atol=1e-1), "bf16 mismatch"

    print("KERNEL_OK")
</pallas_src>

<mosaic_0001>
module attributes {stable_mosaic.version = 11 : i64} {
  func.func @_fused_kernel(%arg0: i32, %arg1: i32, %arg2: memref<1x64x256xf32, #tpu.memory_space<vmem>>, %arg3: memref<64x64xf32, #tpu.memory_space<vmem>>, %arg4: memref<64x128xf32, #tpu.memory_space<vmem>>, %arg5: memref<1x64x256xf32, #tpu.memory_space<vmem>>) attributes {dimension_semantics = [#tpu.dimension_semantics<parallel>, #tpu.dimension_semantics<parallel>], iteration_bounds = array<i64: 2, 1>, scalar_prefetch = 0 : i64, scratch_operands = 0 : i64, tpu.core_type = #tpu.core_type<tc>, window_params = [{transform_indices = @transform_0, window_bounds = array<i64: 1, 64, 256>}, {pipeline_mode = #tpu.pipeline_mode<synchronous>, transform_indices = @transform_1, window_bounds = array<i64: 64, 64>}, {pipeline_mode = #tpu.pipeline_mode<synchronous>, transform_indices = @transform_2, window_bounds = array<i64: 64, 128>}, {transform_indices = @transform_3, window_bounds = array<i64: 1, 64, 256>}]} {
    %c0 = arith.constant 0 : index
    %c0_0 = arith.constant 0 : index
    %0 = vector.load %arg3[%c0, %c0_0] : memref<64x64xf32, #tpu.memory_space<vmem>>, vector<64x64xf32>
    %c0_1 = arith.constant 0 : index
    %c0_2 = arith.constant 0 : index
    %c0_3 = arith.constant 0 : index
    %1 = vector.load %arg2[%c0_1, %c0_2, %c0_3] : memref<1x64x256xf32, #tpu.memory_space<vmem>>, vector<1x64x256xf32>
    %2 = vector.shape_cast %1 : vector<1x64x256xf32> to vector<64x256xf32>
    %cst = arith.constant dense<0.000000e+00> : vector<64x256xf32>
    %3 = tpu.matmul %0, %2, %cst {dimension_numbers = #tpu.dot_dimension_numbers<[1], [0], [0], [1], [0, 0, 1, 1], [], []>} : vector<64x64xf32>, vector<64x256xf32>, vector<64x256xf32> -> vector<64x256xf32>
    %c0_4 = arith.constant 0 : index
    %c0_5 = arith.constant 0 : index
    %4 = vector.load %arg4[%c0_4, %c0_5] : memref<64x128xf32, #tpu.memory_space<vmem>>, vector<64x128xf32>
    %5 = vector.extract_strided_slice %4 {offsets = [0, 0], sizes = [64, 1], strides = [1, 1]} : vector<64x128xf32> to vector<64x1xf32>
    %6 = vector.broadcast %5 : vector<64x1xf32> to vector<64x256xf32>
    %7 = arith.addf %3, %6 : vector<64x256xf32>
    %c0_6 = arith.constant 0 : index
    %c0_7 = arith.constant 0 : index
    %c0_8 = arith.constant 0 : index
    %8 = vector.load %arg5[%c0_6, %c0_7, %c0_8] : memref<1x64x256xf32, #tpu.memory_space<vmem>>, vector<1x64x256xf32>
    %9 = vector.shape_cast %8 : vector<1x64x256xf32> to vector<64x256xf32>
    %10 = vector.shape_cast %7 : vector<64x256xf32> to vector<1x64x256xf32>
    tpu.vector_store %arg5[%c0_6, %c0_7, %c0_8], %10 {strides = array<i32>} : memref<1x64x256xf32, #tpu.memory_space<vmem>>, vector<1x64x256xf32>,
    return
  }
  func.func @transform_0(%arg0: i32, %arg1: i32) -> (i32, i32, i32) {
    %c0_i32 = arith.constant 0 : i32
    %c0_i32_0 = arith.constant 0 : i32
    return %arg0, %c0_i32, %arg1 : i32, i32, i32
  }
  func.func @transform_1(%arg0: i32, %arg1: i32) -> (i32, i32) {
    %c0_i32 = arith.constant 0 : i32
    %c0_i32_0 = arith.constant 0 : i32
    %c0_i32_1 = arith.constant 0 : i32
    return %c0_i32, %c0_i32_0 : i32, i32
  }
  func.func @transform_2(%arg0: i32, %arg1: i32) -> (i32, i32) {
    %c0_i32 = arith.constant 0 : i32
    %c0_i32_0 = arith.constant 0 : i32
    %c0_i32_1 = arith.constant 0 : i32
    return %c0_i32, %c0_i32_0 : i32, i32
  }
  func.func @transform_3(%arg0: i32, %arg1: i32) -> (i32, i32, i32) {
    %c0_i32 = arith.constant 0 : i32
    %c0_i32_0 = arith.constant 0 : i32
    return %arg0, %c0_i32, %arg1 : i32, i32, i32
  }
}

</mosaic_0001>

<bundles_post_ra>
// kernel: tpu_custom_call.1
= control target key start
LH: loop header
LB: loop body
LE: loop exit
PB: predicated region body
PF: predicated region fallthrough
CT: control target
= control target key end

     0   :  { %8 = vsyncpa [#allocation3], 0  ;;  %s1250_s0 = inlined_call_operand.hbm [shape: f32[2,64,256], index: 0, kind: input, shape index: {}]   ;;  %s1251_s1 = inlined_call_operand.hbm [shape: f32[64,64], index: 1, kind: input, shape index: {}]   ;;  %s1252_s2 = inlined_call_operand.hbm [shape: f32[64,128], index: 2, kind: input, shape index: {}]   ;;  %s1253_s3 = inlined_call_operand.hbm [shape: f32[2,64,256], index: 3, kind: output, shape index: {}]  }
   0x1   :  { %10 = vsyncpa [#allocation3 + $0x1], 0 }
   0x2   :  { %11 = vsyncpa [#allocation6], 0 }
   0x3   :  { %12 = vsyncpa [#allocation4], 0 }
   0x4   :  { %14 = vsyncpa [#allocation4 + $0x1], 0  ;;  %s938_s12 = smov 0   ;;  %s940_s13 = smov 0  }
   0x5   :  { %s942_s14 = smov 0   ;;  %s944_s15 = smov 0  }
   0x6   :  { %s946_s16 = smov 0   ;;  %s948_s17 = smov 0  }
   0x7 LB: > { %s586_s18 = sadd.s32 4294967295, %s904_s17   ;;  %s587_s19 = sadd.s32 4294967294, %s904_s17   ;;  %s904_s17 = sphi %s948_s17, %s20_s17   ;;  %s900_s16 = sphi %s946_s16, %s1275_s16   ;;  %s896_s15 = sphi %s944_s15, %s1274_s15   ;;  %s892_s14 = sphi %s942_s14, %s1273_s14   ;;  %s888_s13 = sphi %s940_s13, %s1272_s13   ;;  %s884_s12 = sphi %s938_s12, %s1271_s12  }
   0x8   : > { %p54_p0 = scmp.ne.s32.totalorder %s888_s13, %s884_s12  ;;  %p972_p1 = scmp.eq.s32.totalorder %s586_s18, 0 }
   0x9   : > { %p976_p2 = scmp.eq.s32.totalorder %s586_s18, 1  ;;  %p128_p3 = scmp.eq.s32.totalorder %s587_s19, 1 }
   0xa   : > { %s1258_s20 = scalar_select %p972_p1, 1, 0 }
   0xb   : > { %p982_p4 = por %p972_p1, %p54_p0  ;;  %p588_p5 = scmp.ge.s32.totalorder %s904_s17, 1 }
   0xc   : > { %p987_p6 = por %p128_p3, %p54_p0  ;;  %p135_p7 = scmp.lt.s32.totalorder %s904_s17, 3 }
   0xd   : > { %s1260_s22 = scalar_select %p982_p4, 1, 0 }
   0xe   : > { %s1261_s23 = scalar_select %p987_p6, 1, 0 }
   0xf   : > { %p992_p8 = pnand %p588_p5, %p135_p7  ;;  %s906_s25 = smov [#allocation5]  }
  0x10   : > { %s147_s26 = sshll.u32 %s906_s25, 4  ;;  %s907_s28 = smov [#allocation7]   ;;  %s996_s26 = int_to_ptr.vmem [resolvable:$true] %s147_s26 }
  0x11   : > { %p651_p9 = pneg %p992_p8  ;;  %s160_s29 = sshll.u32 %s907_s28, 4  ;;  %s1007_s29 = int_to_ptr.vmem [resolvable:$true] %s160_s29 }
  0x12   : > { %s732_s5 = scalar_lea.hbm %s1251_s1, 1024 }
  0x13   : > { %p1003_p11 = pnand %p651_p9, %p972_p1  ;;  %p733_p12 = scmp.ne.s32.totalorder %s1251_s1, %s732_s5 }
  0x14   : > { %p739_p5 = scmp.lt.u32.totalorder %s732_s5, %s1251_s1 }
  0x15   : > { %p734_p13 = pneg %p1003_p11 }
  0x17   : > { %p735_p0 = pnand %p734_p13, %p733_p12 }
  0x19   : > { %p736_p3 = pneg %p735_p0 }
  0x1b   : > { %p741_p7 = pnand %p739_p5, %p736_p3 }
  0x1d   : > { %744 = shalt.err (!%p741_p7)
}
  0x1e   : > { %s745_s10 = scalar_lea.vmem %s996_s26, 1024  ;;  %p753_p1 = scmp.lt.s32.totalorder %s996_s26, %s996_s26 }
  0x1f   : > { %p746_p9 = scmp.ne.s32.totalorder %s996_s26, %s745_s10  ;;  %p754_p12 = scmp.lt.s32.totalorder %s745_s10, %s745_s10 }
  0x21   : > { %p748_p10 = pnand %p746_p9, %p734_p13  ;;  %p755_p0 = por %p754_p12, %p753_p1 }
  0x23   : > { %p749_p6 = pneg %p748_p10 }
  0x25   : > { %p756_p4 = pnand %p755_p0, %p749_p6 }
  0x27   : > { %759 = shalt.err (!%p756_p4)
}
  0x28   : > { %s908_s11 = smov 128   ;;  %s909_s18 = smov 8  }
  0x29   : > { %654 = dma.hbm_to_vmem [thread:$0]  (!%p1003_p11), %s1251_s1, 1024, %s996_s26, [#allocation6], %s908_s11, %s908_s11, %s909_s18  }
  0x2a   : > { %s760_s4 = scalar_lea.hbm %s1252_s2, 1024 }
  0x2b   : > { %p761_p1 = scmp.ne.s32.totalorder %s1252_s2, %s760_s4  ;;  %p767_p10 = scmp.lt.u32.totalorder %s760_s4, %s1252_s2 }
  0x2d   : > { %p763_p4 = pnand %p761_p1, %p734_p13 }
  0x2f   : > { %p764_p6 = pneg %p763_p4 }
  0x31   : > { %p769_p3 = pnand %p767_p10, %p764_p6 }
  0x33   : > { %772 = shalt.err (!%p769_p3)
}
  0x34   : > { %s773_s26 = scalar_lea.vmem %s1007_s29, 1024  ;;  %p781_p12 = scmp.lt.s32.totalorder %s1007_s29, %s1007_s29 }
  0x35   : > { %p774_p5 = scmp.ne.s32.totalorder %s1007_s29, %s773_s26  ;;  %p782_p0 = scmp.lt.s32.totalorder %s773_s26, %s773_s26 }
  0x37   : > { %p776_p7 = pnand %p774_p5, %p734_p13  ;;  %p783_p1 = por %p782_p0, %p781_p12 }
  0x39   : > { %p777_p9 = pneg %p776_p7 }
  0x3b   : > { %p784_p4 = pnand %p783_p1, %p777_p9 }
  0x3d   : > { %787 = shalt.err (!%p784_p4)
}
  0x3e   : > { %657 = dma.hbm_to_vmem [thread:$0]  (!%p1003_p11), %s1252_s2, 1024, %s1007_s29, [#allocation6], %s908_s11, %s908_s11, %s909_s18  }
  0x3f   : > { %s32_s19 = sadd.s32 1, %s900_s16  ;;  %s41_s25 = sadd.s32 1, %s892_s14 }
  0x40   : > { %p34_p13 = scmp.ge.s32.totalorder %s32_s19, 2  ;;  %p48_p6 = scmp.ne.s32.totalorder %s892_s14, %s888_s13 }
  0x41   : > { %p49_p10 = scmp.eq.s32.totalorder %s904_s17, 0  ;;  %p668_p3 = scmp.lt.s32.totalorder %s904_s17, 2 }
  0x42   : > { %s1277_s19 = smov (%p34_p13, %s32_s19), 0  ;;  %p1071_p7 = por %p976_p2, %p48_p6 }
  0x43   : > { %p50_p5 = por %p49_p10, %p48_p6  ;;  %s36_s28 = ssub.s32 %s900_s16, %s1277_s19 }
  0x44   : > { %s1264_s27 = scalar_select %p1071_p7, 1, 0 }
  0x45   : > { %s174_s30 = sand.u32 1, %s892_s14   ;;  %p39_p9 = scmp.eq.s32.totalorder %s36_s28, 0 }
  0x46   : > { %s592_s29 = sshll.u32 %s174_s30, 7  ;;  %s613_s11 = sshll.u32 %s900_s16, 11 }
  0x47   : > { %s1080_s18 = scalar_select %p39_p9, %s892_s14, %s41_s25  }
  0x48   : > { %s1085_s6 = scalar_lea.hbm %s1250_s0, %s613_s11  ;;  %s178_s21 = scalar_lea.vmem [#allocation2], %s592_s29 }
  0x49   : > { %s187_s7 = sshll.u32 %s178_s21, 4  ;;  %p1089_p2 = pnand %p668_p3, %p50_p5  ;;  %s1093_s7 = int_to_ptr.vmem [resolvable:$true] %s187_s7 }
  0x4a   : > { %s1095_s26 = scalar_lea.sflag [#allocation3], %s174_s30  ;;  %s788_s9 = scalar_lea.hbm %s1085_s6, 2048 }
  0x4b   : > { %p789_p11 = scmp.ne.s32.totalorder %s1085_s6, %s788_s9  ;;  %p790_p12 = pneg %p1089_p2 }
  0x4c   : > { %s793_s28 = scalar_lea.hbm %s1250_s0, 4096  ;;  %p794_p4 = scmp.lt.u32.totalorder %s1085_s6, %s1250_s0 }
  0x4d   : > { %p791_p0 = pnand %p790_p12, %p789_p11  ;;  %p795_p13 = scmp.lt.u32.totalorder %s793_s28, %s788_s9 }
  0x4e   : > { %p797_p10 = scmp.lt.u32.totalorder %s788_s9, %s1085_s6 }
  0x4f   : > { %p792_p1 = pneg %p791_p0  ;;  %p796_p6 = por %p795_p13, %p794_p4 }
  0x51   : > { %p798_p3 = por %p797_p10, %p796_p6 }
  0x53   : > { %p799_p5 = pnand %p798_p3, %p792_p1 }
  0x55   : > { %802 = shalt.err (!%p799_p5)
}
  0x56   : > { %s803_s30 = scalar_lea.vmem %s1093_s7, 2048  ;;  %s910_s4 = smov [#allocation2]  }
  0x57   : > { %p804_p9 = scmp.ne.s32.totalorder %s1093_s7, %s803_s30  ;;  %s808_s5 = sshll.u32 %s910_s4, 4  ;;  %s809_s5 = int_to_ptr.vmem [resolvable:$false] %s808_s5 }
  0x58   : > { %s810_s21 = scalar_lea.vmem %s809_s5, 4096  ;;  %p811_p7 = scmp.lt.s32.totalorder %s1093_s7, %s809_s5 }
  0x59   : > { %p806_p11 = pnand %p804_p9, %p790_p12  ;;  %p812_p4 = scmp.lt.s32.totalorder %s810_s21, %s803_s30 }
  0x5b   : > { %p807_p0 = pneg %p806_p11  ;;  %p813_p13 = por %p812_p4, %p811_p7 }
  0x5d   : > { %p814_p6 = pnand %p813_p13, %p807_p0 }
  0x5f   : > { %817 = shalt.err (!%p814_p6)
}
  0x60   : > { %s911_s9 = smov 256   ;;  %s912_s10 = smov 16  }
  0x61   : > { %661 = dma.hbm_to_vmem [thread:$0]  (!%p1089_p2), %s1085_s6, 2048, %s1093_s7, %s1095_s26, %s911_s9, %s911_s9, %s912_s10  }
  0x62   : > { %199 = sbr.rel (%p992_p8) target bundleno = 370 (0x172), region = 32  ;;  %s1126_s25 = sand.u32 (!%p992_p8), 1, %s888_s13  }
  0x63   : > { %s596_s28 = sshll.u32 (!%p992_p8), %s1126_s25, 7  ;;  %s202_s29 = scalar_lea.sflag (!%p992_p8), [#allocation3], %s1126_s25 }
  0x64   : > { %s1132_s11 = scalar_lea.vmem (!%p992_p8), [#allocation2], %s596_s28  ;;  %p1266_p7 = scmp.ne.s32.totalorder (!%p992_p8), %s1260_s22, 0 }
  0x69   : > { %871 = dma.done.wait (%p1266_p7), %s202_s29, 2048  }
  0x6a   : > { %873 = vsyncadd (%p1266_p7), %s202_s29, 4294965248  ;;  %p1267_p2 = scmp.ne.s32.totalorder %s1258_s20, 0 }
  0x6c   : > { %875 = dma.done.wait (%p1267_p2), [#allocation6], 2048  }
  0x6d   : > { %877 = vsyncadd (%p1267_p2), [#allocation6], 4294965248  ;;  %v913_v0 = vmov 0.0   ;;  %v914_v1 = vmov 0   ;;  %v247_v2 = vld [vmem:[%s1132_s11 + $0x8] sm:$0xff]  ;;  %v249_v3 = vld [vmem:[%s1132_s11 + $0x18] sm:$0xff] }
  0x6e   : > { %399 = vmatprep.mubr.f32.mxu0 %v913_v0  ;;  %423 = vmatprep.mubr.f32.mxu1 %v913_v0  ;;  %v246_v4 = vld [vmem:[%s1132_s11] sm:$0xff]  ;;  %v615_v5 = vpack.c.bf16 %v249_v3, %v247_v2  ;;  %v248_v6 = vld [vmem:[%s1132_s11 + $0x10] sm:$0xff]  ;;  %v251_v7 = vld [vmem:[%s1132_s11 + $0x28] sm:$0xff]  ;;  %vm310_vm0 = vcmask 523264   ;;  %s1176_s20 = scalar_lea.vmem [#allocation8], %s596_s28  ;;  %s614_s22 = sshll.u32 %s896_s15, 11 }
  0x6f   : > { %731 = vset.pattern.permute.xlu1 %v914_v1  ;;  %730 = vset.pattern.permute.xlu0 %v914_v1  ;;  %v253_v8 = vld [vmem:[%s1132_s11 + $0x38] sm:$0xff]  ;;  %v617_v9 = vpack.c.bf16 %v248_v6, %v246_v4  ;;  %v250_v11 = vld [vmem:[%s1132_s11 + $0x20] sm:$0xff]  ;;  %v252_v12 = vld [vmem:[%s1132_s11 + $0x30] sm:$0xff]  ;;  %s480_s24 = sshll.u32 %s1176_s20, 4  ;;  %s1195_s7 = scalar_lea.hbm %s1253_s3, %s614_s22  ;;  %s1197_s24 = int_to_ptr.vmem [resolvable:$true] %s480_s24 }
  0x70   : > { %v619_v10 = vpack.c.bf16 %v253_v8, %v251_v7  ;;  %v255_v13 = vld [vmem:[%s1132_s11 + $0x48] sm:$0xff]  ;;  %616 = vmatprep.subr.bf16.mxu0 %v615_v5  ;;  %631 = vmatprep.subr.bf16.mxu1 %v615_v5  ;;  %v257_v14 = vld [vmem:[%s1132_s11 + $0x58] sm:$0xff]  ;;  %v621_v15 = vpack.c.bf16 %v252_v12, %v250_v11  ;;  %v254_v17 = vld [vmem:[%s1132_s11 + $0x40] sm:$0xff]  ;;  %s465_s8 = scalar_lea.sflag [#allocation4], %s1126_s25  ;;  %s818_s26 = scalar_lea.vmem %s1197_s24, 2048 }
  0x71   : > { %618 = vmatpush1.bf16.msra.mxu0 %v617_v9  ;;  %635 = vmatpush1.bf16.msra.mxu1 %v617_v9  ;;  %v623_v16 = vpack.c.bf16 %v257_v14, %v255_v13  ;;  %v256_v18 = vld [vmem:[%s1132_s11 + $0x50] sm:$0xff]  ;;  %v259_v19 = vld [vmem:[%s1132_s11 + $0x68] sm:$0xff]  ;;  %v261_v20 = vld [vmem:[%s1132_s11 + $0x78] sm:$0xff]  ;;  %p819_p8 = scmp.ne.s32.totalorder %s1197_s24, %s818_s26  ;;  %p1268_p12 = scmp.ne.s32.totalorder %s1264_s27, 0 }
  0x72   : > { %620 = vmatprep.subr.bf16.mxu0 %v619_v10  ;;  %632 = vmatprep.subr.bf16.mxu1 %v619_v10  ;;  %v625_v21 = vpack.c.bf16 %v256_v18, %v254_v17  ;;  %v264_v22 = vld [vmem:[#allocation7 + $0x10] sm:$0xff]  ;;  %v262_v23 = vld [vmem:[#allocation7] sm:$0xff]  ;;  %v627_v24 = vpack.c.bf16 %v261_v20, %v259_v19  ;;  %v265_v27 = vld [vmem:[#allocation7 + $0x18] sm:$0xff]  ;;  %s915_s30 = smov [#allocation8]  }
  0x73   : > { %v258_v25 = vld [vmem:[%s1132_s11 + $0x60] sm:$0xff]  ;;  %v260_v26 = vld [vmem:[%s1132_s11 + $0x70] sm:$0xff]  ;;  %282 = vperm.xlu1 %731, %v264_v22   ;;  %272 = vperm.xlu0 %730, %v262_v23   ;;  %v263_v28 = vld [vmem:[#allocation7 + $0x8] sm:$0xff]  ;;  %p820_p1 = pnand %p819_p8, %p1268_p12  ;;  %s822_s4 = sshll.u32 %s915_s30, 4  ;;  %s823_s4 = int_to_ptr.vmem [resolvable:$false] %s822_s4 }
  0x74   : > { %v629_v29 = vpack.c.bf16 %v260_v26, %v258_v25  ;;  %v267_v30 = vld [vmem:[#allocation7 + $0x28] sm:$0xff]  ;;  %v266_v31 = vld [vmem:[#allocation7 + $0x20] sm:$0xff]  ;;  %v269_v34 = vld [vmem:[#allocation7 + $0x38] sm:$0xff]  ;;  %s824_s5 = scalar_lea.vmem %s823_s4, 4096  ;;  %p825_p3 = scmp.lt.s32.totalorder %s1197_s24, %s823_s4 }
  0x75   : > { %622 = vmatpush1.bf16.msra.mxu0 %v621_v15  ;;  %636 = vmatpush1.bf16.msra.mxu1 %v621_v15  ;;  %v238_v32 = vld [vmem:[#allocation5] sm:$0xff]  ;;  %v268_v35 = vld [vmem:[#allocation7 + $0x30] sm:$0xff]  ;;  %v239_v36 = vld [vmem:[#allocation5 + $0x8] sm:$0xff]  ;;  %p821_p10 = pneg %p820_p1  ;;  %p826_p5 = scmp.lt.s32.totalorder %s824_s5, %s818_s26 }
  0x76   : > { %624 = vmatprep.subr.bf16.mxu0 %v623_v16  ;;  %633 = vmatprep.subr.bf16.mxu1 %v623_v16  ;;  %v242_v33 = vld [vmem:[#allocation5 + $0x20] sm:$0xff]  ;;  %v243_v37 = vld [vmem:[#allocation5 + $0x28] sm:$0xff]  ;;  %v240_v38 = vld [vmem:[#allocation5 + $0x10] sm:$0xff] }
  0x77   : > { %287 = vperm.xlu1 %731, %v265_v27   ;;  %277 = vperm.xlu0 %730, %v263_v28   ;;  %v244_v39 = vld [vmem:[#allocation5 + $0x30] sm:$0xff]  ;;  %v241_v40 = vld [vmem:[#allocation5 + $0x18] sm:$0xff]  ;;  %p827_p9 = por %p826_p5, %p825_p3 }
  0x78   : > { %v245_v41 = vld [vmem:[#allocation5 + $0x38] sm:$0xff] }
  0x79   : > { %626 = vmatpush1.bf16.msra.mxu0 %v625_v21  ;;  %637 = vmatpush1.bf16.msra.mxu1 %v625_v21  ;;  %p828_p11 = pnand %p827_p9, %p821_p10 }
  0x7a   : > { %628 = vmatprep.subr.bf16.mxu0 %v627_v24  ;;  %634 = vmatprep.subr.bf16.mxu1 %v627_v24 }
  0x7b   : > { %297 = vperm.xlu1 %731, %v267_v30   ;;  %292 = vperm.xlu0 %730, %v266_v31  }
  0x7d   : > { %630 = vmatpush1.bf16.msra.mxu0 %v629_v29  ;;  %638 = vmatpush1.bf16.msra.mxu1 %v629_v29 }
  0x7f   : > { %307 = vperm.xlu1 %731, %v269_v34   ;;  %302 = vperm.xlu0 %730, %v268_v35  }
  0x80   : > { %600 = vmatmul.mubr.msk.f32.vlgmr.msra.gmra.mrb[0].mxu0 %vm310_vm0, %v238_v32  ;;  %604 = vmatmul.mubr.msk.f32.vlgmr.msra.gmra.mrb[0].mxu1 %vm310_vm0, %v242_v33 }
  0x81   : > { %405 = vmatprep.mubr.f32.mxu0 %v913_v0  ;;  %429 = vmatprep.mubr.f32.mxu1 %v913_v0 }
  0x84   : > { %601 = vmatmul.mubr.msk.f32.gmra.mrb[2].mxu0 %vm310_vm0, %v239_v36  ;;  %605 = vmatmul.mubr.msk.f32.gmra.mrb[2].mxu1 %vm310_vm0, %v243_v37 }
  0x85   : > { %411 = vmatprep.mubr.f32.mxu0 %v913_v0  ;;  %435 = vmatprep.mubr.f32.mxu1 %v913_v0 }
  0x88   : > { %602 = vmatmul.mubr.msk.f32.gmra.mrb[4].mxu0 %vm310_vm0, %v240_v38  ;;  %606 = vmatmul.mubr.msk.f32.gmra.mrb[4].mxu1 %vm310_vm0, %v244_v39 }
  0x89   : > { %417 = vmatprep.mubr.f32.mxu0 %v913_v0  ;;  %441 = vmatprep.mubr.f32.mxu1 %v913_v0 }
  0x8c   : > { %603 = vmatmul.mubr.msk.f32.gmra.mrb[6].mxu0 %vm310_vm0, %v241_v40  ;;  %607 = vmatmul.mubr.msk.f32.gmra.mrb[6].mxu1 %vm310_vm0, %v245_v41 }
  0xf2   : > { %v273_v42 = vpop.permute.xlu0 %272  ;;  %v283_v43 = vpop.permute.xlu1 %282 }
  0xf6   : > { %v278_v44 = vpop.permute.xlu0 %277  ;;  %v288_v45 = vpop.permute.xlu1 %287 }
  0xfa   : > { %v293_v46 = vpop.permute.xlu0 %292  ;;  %v298_v55 = vpop.permute.xlu1 %297 }
  0xfe   : > { %v303_v0 = vpop.permute.xlu0 %302  ;;  %v308_v9 = vpop.permute.xlu1 %307 }
 0x153   : > { %v401_v47 = vpop.f32.mrb[0].mxu0  ;;  %v425_v48 = vpop.f32.mrb[0].mxu1 }
 0x154   : > { %v402_v49 = vadd.f32 %v401_v47, %v273_v42  ;;  %v426_v50 = vadd.f32 %v425_v48, %v293_v46  ;;  %v403_v51 = vpop.f32.mrb[1].mxu0  ;;  %v427_v52 = vpop.f32.mrb[1].mxu1 }
 0x155   : > { %v404_v53 = vadd.f32 %v403_v51, %v273_v42  ;;  %v428_v54 = vadd.f32 %v427_v52, %v293_v46 }
 0x156   : > { %448 = vst [vmem:[%s1176_s20] sm:$0xff] %v402_v49  ;;  %456 = vst [vmem:[%s1176_s20 + $0x40] sm:$0xff] %v426_v50 }
 0x157   : > { %449 = vst [vmem:[%s1176_s20 + $0x8] sm:$0xff] %v404_v53  ;;  %457 = vst [vmem:[%s1176_s20 + $0x48] sm:$0xff] %v428_v54  ;;  %v407_v56 = vpop.f32.mrb[2].mxu0  ;;  %v431_v57 = vpop.f32.mrb[2].mxu1 }
 0x158   : > { %v408_v58 = vadd.f32 %v407_v56, %v278_v44  ;;  %v432_v59 = vadd.f32 %v431_v57, %v298_v55  ;;  %v409_v60 = vpop.f32.mrb[3].mxu0  ;;  %v433_v61 = vpop.f32.mrb[3].mxu1 }
 0x159   : > { %v410_v62 = vadd.f32 %v409_v60, %v278_v44  ;;  %v434_v63 = vadd.f32 %v433_v61, %v298_v55 }
 0x15a   : > { %450 = vst [vmem:[%s1176_s20 + $0x10] sm:$0xff] %v408_v58  ;;  %458 = vst [vmem:[%s1176_s20 + $0x50] sm:$0xff] %v432_v59 }
 0x15b   : > { %451 = vst [vmem:[%s1176_s20 + $0x18] sm:$0xff] %v410_v62  ;;  %459 = vst [vmem:[%s1176_s20 + $0x58] sm:$0xff] %v434_v63  ;;  %v413_v1 = vpop.f32.mrb[4].mxu0  ;;  %v437_v2 = vpop.f32.mrb[4].mxu1 }
 0x15c   : > { %v414_v3 = vadd.f32 %v413_v1, %v283_v43  ;;  %v438_v4 = vadd.f32 %v437_v2, %v303_v0  ;;  %v415_v5 = vpop.f32.mrb[5].mxu0  ;;  %v439_v6 = vpop.f32.mrb[5].mxu1 }
 0x15d   : > { %v416_v7 = vadd.f32 %v415_v5, %v283_v43  ;;  %v440_v8 = vadd.f32 %v439_v6, %v303_v0 }
 0x15e   : > { %452 = vst [vmem:[%s1176_s20 + $0x20] sm:$0xff] %v414_v3  ;;  %460 = vst [vmem:[%s1176_s20 + $0x60] sm:$0xff] %v438_v4 }
 0x15f   : > { %453 = vst [vmem:[%s1176_s20 + $0x28] sm:$0xff] %v416_v7  ;;  %461 = vst [vmem:[%s1176_s20 + $0x68] sm:$0xff] %v440_v8  ;;  %v419_v10 = vpop.f32.mrb[6].mxu0  ;;  %v443_v11 = vpop.f32.mrb[6].mxu1 }
 0x160   : > { %v420_v12 = vadd.f32 %v419_v10, %v288_v45  ;;  %v444_v13 = vadd.f32 %v443_v11, %v308_v9  ;;  %v421_v14 = vpop.f32.mrb[7].mxu0  ;;  %v445_v15 = vpop.f32.mrb[7].mxu1 }
 0x161   : > { %v422_v16 = vadd.f32 %v421_v14, %v288_v45  ;;  %v446_v17 = vadd.f32 %v445_v15, %v308_v9 }
 0x162   : > { %454 = vst [vmem:[%s1176_s20 + $0x30] sm:$0xff] %v420_v12  ;;  %462 = vst [vmem:[%s1176_s20 + $0x70] sm:$0xff] %v444_v13 }
 0x163   : > { %455 = vst [vmem:[%s1176_s20 + $0x38] sm:$0xff] %v422_v16  ;;  %463 = vst [vmem:[%s1176_s20 + $0x78] sm:$0xff] %v446_v17 }
 0x164   : > { %831 = shalt.err (!%p828_p11)
}
 0x165   : > { %s832_s21 = scalar_lea.hbm %s1195_s7, 2048  ;;  %s836_s28 = scalar_lea.hbm %s1253_s3, 4096 }
 0x166   : > { %p833_p0 = scmp.ne.s32.totalorder %s1195_s7, %s832_s21  ;;  %p837_p6 = scmp.lt.u32.totalorder %s1195_s7, %s1253_s3 }
 0x167   : > { %p838_p7 = scmp.lt.u32.totalorder %s836_s28, %s832_s21  ;;  %p840_p8 = scmp.lt.u32.totalorder %s832_s21, %s1195_s7 }
 0x168   : > { %p834_p4 = pnand %p833_p0, %p1268_p12 }
 0x169   : > { %p839_p2 = por %p838_p7, %p837_p6 }
 0x16a   : > { %p835_p13 = pneg %p834_p4 }
 0x16b   : > { %p841_p1 = por %p840_p8, %p839_p2 }
 0x16d   : > { %p842_p10 = pnand %p841_p1, %p835_p13 }
 0x16f   : > { %845 = shalt.err (!%p842_p10)
}
 0x170   : > { %s916_s20 = smov 256   ;;  %s917_s22 = smov 16  }
 0x171   : > { %649 = dma.vmem_to_hbm [thread:$0]  (%p1268_p12), %s1197_s24, 2048, %s1195_s7, %s465_s8, %s916_s20, %s916_s20, %s917_s22  }
 0x172 PF: > { %s495_s6 = sand.u32 1, %s884_s12   ;;  %p1269_p3 = scmp.ne.s32.totalorder %s1261_s23, 0 }
 0x173   : > { %p1270_p5 = scmp.ge.s32.totalorder %s904_s17, 2  ;;  %s496_s15 = scalar_lea.sflag [#allocation4], %s495_s6 }
 0x175   : > { %p663_p9 = pnand %p1270_p5, %p1269_p3 }
 0x177   : > { %879 = dma.done.wait (!%p663_p9), %s496_s15, 2048  }
 0x178   : > { %881 = vsyncadd (!%p663_p9), %s496_s15, 4294965248  ;;  %s20_s17 = sadd.s32 1, %s904_s17   ;;  %s1271_s12 = smov %s888_s13 }
 0x179   : > { %p17_p11 = scmp.ge.s32.totalorder %s20_s17, 4   ;;  %s1272_s13 = smov %s892_s14 }
 0x17a   : > { %s1273_s14 = smov %s1080_s18  ;;  %s1274_s15 = smov %s900_s16 }
 0x17b   : > { %s1275_s16 = smov %s1277_s19  ;;  %19 = sbr.rel (!%p17_p11) target bundleno = 7 (0x7), region = 85 }
 0x182   :  { %501 = vsyncpa [#allocation3], 1 }
 0x183   :  { %503 = vsyncpa [#allocation3 + $0x1], 1 }
 0x184   :  { %504 = vsyncpa [#allocation6], 1 }
 0x185   :  { %505 = vsyncpa [#allocation4], 1 }
 0x186   :  { %507 = vsyncpa [#allocation4 + $0x1], 1 }

</bundles_post_ra>
